<compile_context>
chip_gen: v5e
topology: v5e:2x2
jax: 0.10.0
libtpu: 0.0.40
codegen_flags: <defaults>
</compile_context>

<pallas_src>
import functools
import math

import jax
import jax.numpy as jnp
from jax import lax
from jax.experimental import pallas as pl
from jax.experimental.pallas import tpu as pltpu


def _pick_block(dim, target, quantum):
    """Largest block <= target that divides `dim` and is a multiple of `quantum`."""
    if dim <= target:
        return dim
    b = (target // quantum) * quantum
    while b >= quantum:
        if dim % b == 0:
            return b
        b -= quantum
    # TODO(synk): pad the sequence for awkward lengths instead of degenerating to a
    # full-length (un-tiled) block, which can blow VMEM for long sequences.
    return dim


def _gqa_flash_kernel(*refs, hpg, has_mask, causal):
    if has_mask:
        q_ref, k_ref, v_ref, mask_ref, o_ref, m_scr, l_scr, acc_scr = refs
    else:
        q_ref, k_ref, v_ref, o_ref, m_scr, l_scr, acc_scr = refs
        mask_ref = None

    qi = pl.program_id(2)
    ki = pl.program_id(3)
    rows = q_ref.shape[2]          # hpg * tq   (all heads of the group stacked)
    tq = rows // hpg
    tk = k_ref.shape[2]

    @pl.when(ki == 0)
    def _init():
        m_scr[...] = jnp.full(m_scr.shape, -jnp.inf, dtype=jnp.float32)
        l_scr[...] = jnp.zeros(l_scr.shape, dtype=jnp.float32)
        acc_scr[...] = jnp.zeros(acc_scr.shape, dtype=jnp.float32)

    def _attend():
        q = q_ref[0, 0]                      # (hpg*tq, d), softmax scale pre-folded
        k = k_ref[0, 0]                      # (tk, d)
        v = v_ref[0, 0]                      # (tk, d)
        # scores = q @ k^T, contracting head_dim directly (no explicit transpose).
        s = lax.dot_general(q, k, (((1,), (1,)), ((), ())),
                            preferred_element_type=jnp.float32)   # (hpg*tq, tk)

        if has_mask:
            neg = mask_ref[0] == 0                                # (tq, tk) bool
            s = jnp.where(neg[None], -1e9,
                          s.reshape(hpg, tq, tk)).reshape(rows, tk)
        elif causal:
            q_pos = qi * tq + lax.broadcasted_iota(jnp.int32, (tq, tk), 0)
            k_pos = ki * tk + lax.broadcasted_iota(jnp.int32, (tq, tk), 1)
            neg = k_pos > q_pos
            s = jnp.where(neg[None], -1e9,
                          s.reshape(hpg, tq, tk)).reshape(rows, tk)

        # Online (flash) softmax update for this key block; stats stay f32.
        m_prev = m_scr[...]
        m_new = jnp.maximum(m_prev, jnp.max(s, axis=-1, keepdims=True))
        alpha = jnp.exp(m_prev - m_new)
        p = jnp.exp(s - m_new)
        l_scr[...] = alpha * l_scr[...] + jnp.sum(p, axis=-1, keepdims=True)
        acc_scr[...] = alpha * acc_scr[...] + jnp.dot(
            p.astype(v.dtype), v, preferred_element_type=jnp.float32)
        m_scr[...] = m_new

    if causal and not has_mask:
        # Skip key blocks that lie entirely above the diagonal (2x fewer blocks).
        visible = ki * tk <= qi * tq + (tq - 1)
        pl.when(visible)(_attend)
    else:
        _attend()

    @pl.when(ki == pl.num_programs(3) - 1)
    def _finalize():
        o = acc_scr[...] * pl.reciprocal(l_scr[...], approx=False)
        o_ref[0, 0] = o.astype(o_ref.dtype)


def gqa_attention(x, w_qkv, w_o, attention_mask=None, *,
                  num_heads, num_groups, head_dim,
                  causal=False, block_q=128, block_k=128,
                  compute_dtype=None, kv_buffer_count=None, vmem_limit_bytes=None):
    """Fused GQA attention forward matching the PyTorch GQAAttention module.

    x              : (bsz, seq, hidden)
    w_qkv          : (q_dim + 2*kv_dim, hidden)   nn.Linear weight layout
    w_o            : (hidden, q_dim)              nn.Linear weight layout
    attention_mask : optional, broadcastable to (bsz, seq, seq); 0 = mask out.
    causal         : if True and no mask is given, use in-kernel causal masking
                     with whole-block skipping.
    compute_dtype  : optional MXU-operand dtype (e.g. jnp.bfloat16 on v6e/v7x);
                     accumulation and softmax stats stay float32.
    """
    bsz, seq_len, hidden = x.shape
    q_dim = num_heads * head_dim
    kv_dim = num_groups * head_dim
    hpg = num_heads // num_groups
    assert num_heads % num_groups == 0
    assert w_qkv.shape == (q_dim + 2 * kv_dim, hidden)
    assert w_o.shape == (hidden, q_dim)

    cdtype = jnp.dtype(compute_dtype) if compute_dtype is not None else jnp.dtype(x.dtype)

    # ---- Hoisted QKV projection (single wide XLA GEMM, computed once) ----------
    scale = 1.0 / math.sqrt(head_dim)
    w_in = jnp.concatenate([w_qkv[:q_dim] * scale, w_qkv[q_dim:]], axis=0).T  # (hidden, q+2kv)
    qkv = jnp.dot(x.astype(cdtype), w_in.astype(cdtype),
                  preferred_element_type=jnp.float32)                         # (B, S, q+2kv)
    q = qkv[..., :q_dim]
    k = qkv[..., q_dim:q_dim + kv_dim]
    v = qkv[..., q_dim + kv_dim:]

    has_mask = attention_mask is not None
    use_causal = bool(causal) and not has_mask

    sub_q = 16 if cdtype.itemsize == 2 else 8
    tq = _pick_block(seq_len, block_q, sub_q)
    tk = _pick_block(seq_len, block_k, 128)   # lane dim of the score block
    nq = seq_len // tq
    nk = seq_len // tk
    grid = (bsz, num_groups, nq, nk)

    # Q laid out per (batch, group, q-block) as an (hpg*tq, d) slab: all heads of a
    # group share one wide QK^T / PV matmul per key tile.
    qh = q.reshape(bsz, nq, tq, num_groups, hpg, head_dim)
    qh = qh.transpose(0, 3, 1, 4, 2, 5).reshape(bsz, num_groups, nq * hpg * tq, head_dim)
    qh = qh.astype(cdtype)
    kh = k.reshape(bsz, seq_len, num_groups, head_dim).transpose(0, 2, 1, 3).astype(cdtype)
    vh = v.reshape(bsz, seq_len, num_groups, head_dim).transpose(0, 2, 1, 3).astype(cdtype)

    kv_kwargs = {}
    if kv_buffer_count is not None:   # e.g. 3 on v7x once the inner step is short
        kv_kwargs = dict(pipeline_mode=pl.Buffered(kv_buffer_count))

    in_specs = [
        pl.BlockSpec((1, 1, hpg * tq, head_dim), lambda b, g, i, j: (b, g, i, 0)),
        pl.BlockSpec((1, 1, tk, head_dim), lambda b, g, i, j: (b, g, j, 0), **kv_kwargs),
        pl.BlockSpec((1, 1, tk, head_dim), lambda b, g, i, j: (b, g, j, 0), **kv_kwargs),
    ]
    inputs = [qh, kh, vh]

    mask_i8 = None
    if has_mask:
        # TODO(synk): per-head (true 4-D) masks are not plumbed; the module's
        # broadcastable-(bsz, S, S) case is supported.
        m = attention_mask
        if m.ndim == 4 and m.shape[1] == 1:
            m = m[:, 0]
        mask_i8 = (jnp.broadcast_to(m, (bsz, seq_len, seq_len)) != 0).astype(jnp.int8)
        in_specs.append(pl.BlockSpec((1, tq, tk), lambda b, g, i, j: (b, i, j), **kv_kwargs))
        inputs.append(mask_i8)

    kernel = functools.partial(_gqa_flash_kernel, hpg=hpg,
                               has_mask=has_mask, causal=use_causal)

    flops = 4 * bsz * num_heads * seq_len * seq_len * head_dim
    transcendentals = bsz * num_heads * seq_len * seq_len
    bytes_accessed = int(
        qh.size * qh.dtype.itemsize
        + nq * (kh.size + vh.size) * kh.dtype.itemsize          # K/V re-read per q block
        + bsz * num_groups * hpg * seq_len * head_dim * jnp.dtype(x.dtype).itemsize
        + (mask_i8.size * num_groups if has_mask else 0))

    o_heads = pl.pallas_call(
        kernel,
        out_shape=jax.ShapeDtypeStruct(
            (bsz, num_groups, nq * hpg * tq, head_dim), x.dtype),
        grid_spec=pltpu.PrefetchScalarGridSpec(
            num_scalar_prefetch=0,
            grid=grid,
            in_specs=in_specs,
            out_specs=pl.BlockSpec((1, 1, hpg * tq, head_dim),
                                   lambda b, g, i, j: (b, g, i, 0)),
            scratch_shapes=[
                pltpu.VMEM((hpg * tq, 1), jnp.float32),          # running max
                pltpu.VMEM((hpg * tq, 1), jnp.float32),          # running sum
                pltpu.VMEM((hpg * tq, head_dim), jnp.float32),   # output accumulator
            ]),
        compiler_params=pltpu.CompilerParams(
            dimension_semantics=("parallel", "parallel", "parallel", "arbitrary"),
            vmem_limit_bytes=vmem_limit_bytes),
        cost_estimate=pl.CostEstimate(flops=flops,
                                      transcendentals=transcendentals,
                                      bytes_accessed=bytes_accessed),
    )(*inputs)

    # Gather heads back to (B, S, q_dim) and apply the (hoisted) output projection.
    o = o_heads.reshape(bsz, num_groups, nq, hpg, tq, head_dim)
    o = o.transpose(0, 2, 4, 1, 3, 5).reshape(bsz, seq_len, q_dim)
    out = jnp.dot(o.astype(cdtype), w_o.T.astype(cdtype),
                  preferred_element_type=jnp.float32)
    return out.astype(x.dtype)


def gqa_attention_ref(x, w_qkv, w_o, attention_mask=None, *,
                      num_heads, num_groups, head_dim):
    """Pure-JAX reference mirroring the PyTorch module exactly."""
    bsz, seq_len, _ = x.shape
    q_dim = num_heads * head_dim
    kv_dim = num_groups * head_dim
    hpg = num_heads // num_groups

    qkv = x @ w_qkv.T
    q, k, v = (qkv[..., :q_dim],
               qkv[..., q_dim:q_dim + kv_dim],
               qkv[..., q_dim + kv_dim:])
    q = q.reshape(bsz, seq_len, num_heads, head_dim).transpose(0, 2, 1, 3)
    k = k.reshape(bsz, seq_len, num_groups, head_dim).transpose(0, 2, 1, 3)
    v = v.reshape(bsz, seq_len, num_groups, head_dim).transpose(0, 2, 1, 3)
    if num_groups != num_heads:
        k = jnp.repeat(k, hpg, axis=1)
        v = jnp.repeat(v, hpg, axis=1)
    scores = (q @ jnp.swapaxes(k, -1, -2)) / math.sqrt(head_dim)
    if attention_mask is not None:
        m = jnp.broadcast_to(attention_mask, (bsz, seq_len, seq_len))[:, None]
        scores = jnp.where(m == 0, -1e9, scores)
    probs = jax.nn.softmax(scores, axis=-1)
    o = probs @ v
    o = o.transpose(0, 2, 1, 3).reshape(bsz, seq_len, q_dim)
    return o @ w_o.T


if __name__ == "__main__":
    # GQAAttnConfig(hidden_dim=32, head_dim=8, num_heads=4, num_groups=2)
    hidden_dim, head_dim, num_heads, num_groups = 32, 8, 4, 2
    q_dim = num_heads * head_dim
    kv_dim = num_groups * head_dim

    key = jax.random.PRNGKey(0)
    kq, ko, kx1, kx2 = jax.random.split(key, 4)

    # Deterministic init mimicking nn.Linear default (uniform +/- 1/sqrt(fan_in)).
    bound = 1.0 / math.sqrt(hidden_dim)
    w_qkv = jax.random.uniform(kq, (q_dim + 2 * kv_dim, hidden_dim),
                               minval=-bound, maxval=bound, dtype=jnp.float32)
    bound_o = 1.0 / math.sqrt(q_dim)
    w_o = jax.random.uniform(ko, (hidden_dim, q_dim),
                             minval=-bound_o, maxval=bound_o, dtype=jnp.float32)

    def check(x, mask, tag, atol=5e-3, rtol=5e-3, ref_mask="same", **kw):
        out = jax.block_until_ready(
            gqa_attention(x, w_qkv, w_o, attention_mask=mask,
                          num_heads=num_heads, num_groups=num_groups,
                          head_dim=head_dim, **kw))
        rmask = mask if isinstance(ref_mask, str) and ref_mask == "same" else ref_mask
        ref = gqa_attention_ref(x, w_qkv, w_o, attention_mask=rmask,
                                num_heads=num_heads, num_groups=num_groups,
                                head_dim=head_dim)
        err = float(jnp.max(jnp.abs(out - ref)))
        assert jnp.allclose(out, ref, atol=atol, rtol=rtol), \
            f"{tag}: max abs err {err}"

    # 1) small single-tile case, no mask (the module's toy shape).
    x_small = jax.random.normal(kx1, (2, 8, hidden_dim), dtype=jnp.float32)
    check(x_small, None, "small/no-mask")

    # 2) multi-block flash path (2 query blocks x 2 key blocks), no mask.
    x_big = jax.random.normal(kx2, (2, 256, hidden_dim), dtype=jnp.float32)
    check(x_big, None, "tiled/no-mask", block_q=128, block_k=128)

    # 3) generic attention mask streamed as int8 tiles.
    causal_mask = jnp.tril(jnp.ones((256, 256), dtype=jnp.int32))
    check(x_big, causal_mask, "tiled/streamed-mask", block_q=128, block_k=128)

    # 4) causal=True fast path (in-kernel mask + block skipping) vs explicit tril.
    check(x_big, None, "tiled/causal-skip", ref_mask=causal_mask,
          block_q=128, block_k=128, causal=True)

    # 5) bf16 MXU operands (f32 accumulation / softmax stats), looser tolerance.
    check(x_big, None, "tiled/bf16", atol=5e-2, rtol=5e-2,
          block_q=128, block_k=128, compute_dtype=jnp.bfloat16)

    print("KERNEL_OK")
</pallas_src>

<mosaic_0001>
module attributes {stable_mosaic.version = 11 : i64} {
  func.func @_gqa_flash_kernel(%arg0: i32, %arg1: i32, %arg2: i32, %arg3: i32, %arg4: memref<1x1x16x8xf32, #tpu.memory_space<vmem>>, %arg5: memref<1x1x8x8xf32, #tpu.memory_space<vmem>>, %arg6: memref<1x1x8x8xf32, #tpu.memory_space<vmem>>, %arg7: memref<1x1x16x8xf32, #tpu.memory_space<vmem>>, %arg8: memref<16x1xf32, #tpu.memory_space<vmem>>, %arg9: memref<16x1xf32, #tpu.memory_space<vmem>>, %arg10: memref<16x8xf32, #tpu.memory_space<vmem>>) attributes {dimension_semantics = [#tpu.dimension_semantics<parallel>, #tpu.dimension_semantics<parallel>, #tpu.dimension_semantics<parallel>, #tpu.dimension_semantics<arbitrary>], iteration_bounds = array<i64: 2, 2, 1, 1>, scalar_prefetch = 0 : i64, scratch_operands = 3 : i64, tpu.core_type = #tpu.core_type<tc>, window_params = [{transform_indices = @transform_0, window_bounds = array<i64: 1, 1, 16, 8>}, {transform_indices = @transform_1, window_bounds = array<i64: 1, 1, 8, 8>}, {transform_indices = @transform_2, window_bounds = array<i64: 1, 1, 8, 8>}, {transform_indices = @transform_3, window_bounds = array<i64: 1, 1, 16, 8>}]} {
    %c0_i32 = arith.constant 0 : i32
    %0 = arith.cmpi eq, %arg3, %c0_i32 : i32
    %1 = arith.extui %0 : i1 to i32
    %c0_i32_0 = arith.constant 0 : i32
    %2 = arith.cmpi ne, %1, %c0_i32_0 : i32
    scf.if %2 {
      %cst_29 = arith.constant 0xFF800000 : f32
      %35 = vector.broadcast %cst_29 : f32 to vector<16x1xf32>
      %c0_30 = arith.constant 0 : index
      %c0_31 = arith.constant 0 : index
      %36 = vector.load %arg8[%c0_30, %c0_31] : memref<16x1xf32, #tpu.memory_space<vmem>>, vector<16x1xf32>
      tpu.vector_store %arg8[%c0_30, %c0_31], %35 {strides = array<i32>} : memref<16x1xf32, #tpu.memory_space<vmem>>, vector<16x1xf32>,
      %cst_32 = arith.constant 0.000000e+00 : f32
      %37 = vector.broadcast %cst_32 : f32 to vector<16x1xf32>
      %c0_33 = arith.constant 0 : index
      %c0_34 = arith.constant 0 : index
      %38 = vector.load %arg9[%c0_33, %c0_34] : memref<16x1xf32, #tpu.memory_space<vmem>>, vector<16x1xf32>
      tpu.vector_store %arg9[%c0_33, %c0_34], %37 {strides = array<i32>} : memref<16x1xf32, #tpu.memory_space<vmem>>, vector<16x1xf32>,
      %cst_35 = arith.constant 0.000000e+00 : f32
      %39 = vector.broadcast %cst_35 : f32 to vector<16x8xf32>
      %c0_36 = arith.constant 0 : index
      %c0_37 = arith.constant 0 : index
      %40 = vector.load %arg10[%c0_36, %c0_37] : memref<16x8xf32, #tpu.memory_space<vmem>>, vector<16x8xf32>
      tpu.vector_store %arg10[%c0_36, %c0_37], %39 {strides = array<i32>} : memref<16x8xf32, #tpu.memory_space<vmem>>, vector<16x8xf32>,
    } else {
    }
    %c0 = arith.constant 0 : index
    %c0_1 = arith.constant 0 : index
    %c0_2 = arith.constant 0 : index
    %c0_3 = arith.constant 0 : index
    %3 = vector.load %arg4[%c0, %c0_1, %c0_2, %c0_3] : memref<1x1x16x8xf32, #tpu.memory_space<vmem>>, vector<1x1x16x8xf32>
    %4 = vector.shape_cast %3 : vector<1x1x16x8xf32> to vector<16x8xf32>
    %c0_4 = arith.constant 0 : index
    %c0_5 = arith.constant 0 : index
    %c0_6 = arith.constant 0 : index
    %c0_7 = arith.constant 0 : index
    %5 = vector.load %arg5[%c0_4, %c0_5, %c0_6, %c0_7] : memref<1x1x8x8xf32, #tpu.memory_space<vmem>>, vector<1x1x8x8xf32>
    %6 = vector.shape_cast %5 : vector<1x1x8x8xf32> to vector<8x8xf32>
    %c0_8 = arith.constant 0 : index
    %c0_9 = arith.constant 0 : index
    %c0_10 = arith.constant 0 : index
    %c0_11 = arith.constant 0 : index
    %7 = vector.load %arg6[%c0_8, %c0_9, %c0_10, %c0_11] : memref<1x1x8x8xf32, #tpu.memory_space<vmem>>, vector<1x1x8x8xf32>
    %8 = vector.shape_cast %7 : vector<1x1x8x8xf32> to vector<8x8xf32>
    %cst = arith.constant dense<0.000000e+00> : vector<16x8xf32>
    %9 = tpu.matmul %4, %6, %cst {dimension_numbers = #tpu.dot_dimension_numbers<[1], [1], [0], [0], [0, 0, 1, 0], [], []>} : vector<16x8xf32>, vector<8x8xf32>, vector<16x8xf32> -> vector<16x8xf32>
    %c0_12 = arith.constant 0 : index
    %c0_13 = arith.constant 0 : index
    %10 = vector.load %arg8[%c0_12, %c0_13] : memref<16x1xf32, #tpu.memory_space<vmem>>, vector<16x1xf32>
    %cst_14 = arith.constant dense<0xFF800000> : vector<16xf32>
    %11 = vector.multi_reduction <maximumf>, %9, %cst_14 [1] : vector<16x8xf32> to vector<16xf32>
    %12 = vector.shape_cast %11 : vector<16xf32> to vector<16x1xf32>
    %13 = arith.maximumf %10, %12 : vector<16x1xf32>
    %14 = arith.subf %10, %13 : vector<16x1xf32>
    %15 = math.exp %14 : vector<16x1xf32>
    %16 = vector.broadcast %13 : vector<16x1xf32> to vector<16x8xf32>
    %17 = arith.subf %9, %16 : vector<16x8xf32>
    %18 = math.exp %17 : vector<16x8xf32>
    %c0_15 = arith.constant 0 : index
    %c0_16 = arith.constant 0 : index
    %19 = vector.load %arg9[%c0_15, %c0_16] : memref<16x1xf32, #tpu.memory_space<vmem>>, vector<16x1xf32>
    %20 = arith.mulf %15, %19 : vector<16x1xf32>
    %cst_17 = arith.constant dense<0.000000e+00> : vector<16xf32>
    %21 = vector.multi_reduction <add>, %18, %cst_17 [1] : vector<16x8xf32> to vector<16xf32>
    %22 = vector.shape_cast %21 : vector<16xf32> to vector<16x1xf32>
    %23 = arith.addf %20, %22 : vector<16x1xf32>
    %c0_18 = arith.constant 0 : index
    %c0_19 = arith.constant 0 : index
    %24 = vector.load %arg9[%c0_18, %c0_19] : memref<16x1xf32, #tpu.memory_space<vmem>>, vector<16x1xf32>
    tpu.vector_store %arg9[%c0_18, %c0_19], %23 {strides = array<i32>} : memref<16x1xf32, #tpu.memory_space<vmem>>, vector<16x1xf32>,
    %c0_20 = arith.constant 0 : index
    %c0_21 = arith.constant 0 : index
    %25 = vector.load %arg10[%c0_20, %c0_21] : memref<16x8xf32, #tpu.memory_space<vmem>>, vector<16x8xf32>
    %26 = vector.broadcast %15 : vector<16x1xf32> to vector<16x8xf32>
    %27 = arith.mulf %26, %25 : vector<16x8xf32>
    %cst_22 = arith.constant dense<0.000000e+00> : vector<16x8xf32>
    %28 = tpu.matmul %18, %8, %cst_22 {dimension_numbers = #tpu.dot_dimension_numbers<[1], [0], [0], [1], [0, 0, 1, 1], [], []>} : vector<16x8xf32>, vector<8x8xf32>, vector<16x8xf32> -> vector<16x8xf32>
    %29 = arith.addf %27, %28 : vector<16x8xf32>
    %c0_23 = arith.constant 0 : index
    %c0_24 = arith.constant 0 : index
    %30 = vector.load %arg10[%c0_23, %c0_24] : memref<16x8xf32, #tpu.memory_space<vmem>>, vector<16x8xf32>
    tpu.vector_store %arg10[%c0_23, %c0_24], %29 {strides = array<i32>} : memref<16x8xf32, #tpu.memory_space<vmem>>, vector<16x8xf32>,
    %c0_25 = arith.constant 0 : index
    %c0_26 = arith.constant 0 : index
    %31 = vector.load %arg8[%c0_25, %c0_26] : memref<16x1xf32, #tpu.memory_space<vmem>>, vector<16x1xf32>
    tpu.vector_store %arg8[%c0_25, %c0_26], %13 {strides = array<i32>} : memref<16x1xf32, #tpu.memory_space<vmem>>, vector<16x1xf32>,
    %c0_i32_27 = arith.constant 0 : i32
    %32 = arith.cmpi eq, %arg3, %c0_i32_27 : i32
    %33 = arith.extui %32 : i1 to i32
    %c0_i32_28 = arith.constant 0 : i32
    %34 = arith.cmpi ne, %33, %c0_i32_28 : i32
    scf.if %34 {
      %c0_29 = arith.constant 0 : index
      %c0_30 = arith.constant 0 : index
      %35 = vector.load %arg10[%c0_29, %c0_30] : memref<16x8xf32, #tpu.memory_space<vmem>>, vector<16x8xf32>
      %c0_31 = arith.constant 0 : index
      %c0_32 = arith.constant 0 : index
      %36 = vector.load %arg9[%c0_31, %c0_32] : memref<16x1xf32, #tpu.memory_space<vmem>>, vector<16x1xf32>
      %37 = tpu.reciprocal %36 : vector<16x1xf32> -> vector<16x1xf32>
      %38 = vector.broadcast %37 : vector<16x1xf32> to vector<16x8xf32>
      %39 = arith.mulf %35, %38 : vector<16x8xf32>
      %c0_33 = arith.constant 0 : index
      %c0_34 = arith.constant 0 : index
      %c0_35 = arith.constant 0 : index
      %c0_36 = arith.constant 0 : index
      %40 = vector.load %arg7[%c0_33, %c0_34, %c0_35, %c0_36] : memref<1x1x16x8xf32, #tpu.memory_space<vmem>>, vector<1x1x16x8xf32>
      %41 = vector.shape_cast %40 : vector<1x1x16x8xf32> to vector<16x8xf32>
      %42 = vector.shape_cast %39 : vector<16x8xf32> to vector<1x1x16x8xf32>
      tpu.vector_store %arg7[%c0_33, %c0_34, %c0_35, %c0_36], %42 {strides = array<i32>} : memref<1x1x16x8xf32, #tpu.memory_space<vmem>>, vector<1x1x16x8xf32>,
    } else {
    }
    return
  }
  func.func @transform_0(%arg0: i32, %arg1: i32, %arg2: i32, %arg3: i32) -> (i32, i32, i32, i32) {
    %c0_i32 = arith.constant 0 : i32
    %c0_i32_0 = arith.constant 0 : i32
    return %arg0, %arg1, %arg2, %c0_i32 : i32, i32, i32, i32
  }
  func.func @transform_1(%arg0: i32, %arg1: i32, %arg2: i32, %arg3: i32) -> (i32, i32, i32, i32) {
    %c0_i32 = arith.constant 0 : i32
    %c0_i32_0 = arith.constant 0 : i32
    return %arg0, %arg1, %arg3, %c0_i32 : i32, i32, i32, i32
  }
  func.func @transform_2(%arg0: i32, %arg1: i32, %arg2: i32, %arg3: i32) -> (i32, i32, i32, i32) {
    %c0_i32 = arith.constant 0 : i32
    %c0_i32_0 = arith.constant 0 : i32
    return %arg0, %arg1, %arg3, %c0_i32 : i32, i32, i32, i32
  }
  func.func @transform_3(%arg0: i32, %arg1: i32, %arg2: i32, %arg3: i32) -> (i32, i32, i32, i32) {
    %c0_i32 = arith.constant 0 : i32
    %c0_i32_0 = arith.constant 0 : i32
    return %arg0, %arg1, %arg2, %c0_i32 : i32, i32, i32, i32
  }
}

</mosaic_0001>

<bundles_post_ra>
// kernel: tpu_custom_call.1
= control target key start
LH: loop header
LB: loop body
LE: loop exit
PB: predicated region body
PF: predicated region fallthrough
CT: control target
= control target key end

     0   :  { %s831_s12 = smov 0   ;;  %s833_s13 = smov 0   ;;  %s926_s0 = inlined_call_operand.vmem [shape: f32[2,2,16,8], index: 0, kind: input, shape index: {}]   ;;  %s927_s1 = inlined_call_operand.vmem [shape: f32[2,2,8,8], index: 1, kind: input, shape index: {}]   ;;  %s928_s2 = inlined_call_operand.vmem [shape: f32[2,2,8,8], index: 2, kind: input, shape index: {}]   ;;  %s929_s3 = inlined_call_operand.vmem [shape: f32[2,2,16,8], index: 3, kind: output, shape index: {}]  }
   0x1   :  { %s835_s14 = smov 0   ;;  %s837_s15 = smov 0  }
   0x2   :  { %s839_s16 = smov 0  }
   0x3 LB: > { %s35_s17 = sadd.s32 1, %s798_s14  ;;  %s39_s18 = sadd.s32 1, %s802_s15  ;;  %s806_s16 = sphi %s839_s16, %s13_s16   ;;  %s802_s15 = sphi %s837_s15, %s933_s15   ;;  %s798_s14 = sphi %s835_s14, %s932_s14   ;;  %s794_s13 = sphi %s833_s13, %s931_s13   ;;  %s790_s12 = sphi %s831_s12, %s930_s12  }
   0x4   : > { %p37_p0 = scmp.ge.s32.totalorder %s35_s17, 2  ;;  %p690_p1 = scmp.ge.s32.totalorder %s806_s16, 1 }
   0x5   : > { %p220_p2 = scmp.lt.s32.totalorder %s806_s16, 5 }
   0x6   : > { %s935_s17 = smov (%p37_p0, %s35_s17), 0  ;;  %s937_s18 = smov (!%p37_p0, %s39_s18), %s802_s15 }
   0x7   : > { %p221_p3 = pnand %p690_p1, %p220_p2  ;;  %p41_p4 = scmp.ge.s32.totalorder %s937_s18, 2 }
   0x8   : > { %p283_p5 = scmp.lt.s32.totalorder (!%p221_p3), %s794_s13, 1  ;;  %p285_p6 = scmp.lt.s32.totalorder (!%p221_p3), %s790_s12, 1 }
   0x9   : > { %s939_s18 = smov (%p41_p4, %s937_s18), 0  ;;  %224 = sbr.rel (%p221_p3) target bundleno = 678 (0x2a6), region = 32 }
   0xe   : > { %s941_s13 = smov (!%p283_p5, %s794_s13), 1  ;;  %s943_s12 = smov (!%p285_p6, %s790_s12), 1  ;;  %vm341_vm0 = vcmask 64512   ;;  %vm336_vm1 = vcmask 7168   ;;  %v808_v3 = vmov -inf   ;;  %v809_v8 = vmov 0  }
   0xf   : > { %s694_s19 = sshll.u32 %s941_s13, 1  ;;  %s692_s20 = sshll.u32 %s941_s13, 2  ;;  %338 = vst.msk [vmem:[#allocation2 + $0x8] sm:$0xff] %vm336_vm1, %v808_v3  ;;  %753 = vset.pattern.permute.xlu1 %v809_v8  ;;  %754 = vset.pattern.permute.xlu0 %v809_v8  ;;  %v810_v9 = vmov 0.0  }
  0x10   : > { %s861_s21 = sadd.s32 %s694_s19, %s943_s12  ;;  %s691_s22 = sshll.u32 %s943_s12, 1  ;;  %337 = vst.msk [vmem:[#allocation2] sm:$0xff] %vm336_vm1, %v808_v3  ;;  %755 = vset.pattern.permute.xlu2 %v809_v8 }
  0x11   : > { %s695_s23 = sshll.u32 %s861_s21, 3  ;;  %s864_s24 = sadd.s32 %s692_s20, %s691_s22  ;;  %343 = vst.msk [vmem:[#allocation4 + $0x8] sm:$0xff] %vm341_vm0, %v810_v9 }
  0x12   : > { %s306_s27 = scalar_lea.vmem %s927_s1, %s695_s23  ;;  %s693_s28 = sshll.u32 %s864_s24, 3  ;;  %339 = vst.msk [vmem:[#allocation3] sm:$0xff] %vm336_vm1, %v810_v9 }
  0x13   : > { %v346_v0 = vld [vmem:[%s306_s27] sm:$0xff]  ;;  %s294_s4 = scalar_lea.vmem %s926_s0, %s693_s28  ;;  %340 = vst.msk [vmem:[#allocation3 + $0x8] sm:$0xff] %vm336_vm1, %v810_v9  ;;  %s317_s7 = scalar_lea.vmem %s928_s2, %s695_s23 }
  0x14   : > { %708 = vmatpush.xpose.msk.msra.mxu2 %vm341_vm0, %v346_v0  ;;  %v345_v1 = vld [vmem:[%s294_s4 + $0x8] sm:$0xff]  ;;  %701 = vmatpush.xpose.msk.msra.mxu0 %vm341_vm0, %v346_v0  ;;  %v344_v2 = vld [vmem:[%s294_s4] sm:$0xff]  ;;  %342 = vst.msk [vmem:[#allocation4] sm:$0xff] %vm341_vm0, %v810_v9  ;;  %s330_s10 = scalar_lea.vmem %s929_s3, %s693_s28 }
  0x15   : > { %v347_v22 = vld [vmem:[%s317_s7] sm:$0xff] }
  0x16   : > { %v382_v10 = vld [vmem:[#allocation2 + $0x8] sm:$0xff]  ;;  %709 = vmatpush.msra.mxu3 %v347_v22  ;;  %463 = vmatpush.msra.mxu1 %v347_v22 }
  0x17   : > { %703 = vmatmul.msk.f32.vlgmr.msra.gmra.mxu2 %vm341_vm0, %v345_v1  ;;  %702 = vmatmul.msk.f32.vlgmr.msra.gmra.mxu0 %vm341_vm0, %v344_v2  ;;  %v381_v14 = vld [vmem:[#allocation2] sm:$0xff] }
  0x18   : > { %v429_v37 = vld [vmem:[#allocation4 + $0x8] sm:$0xff] }
  0x19   : > { %v413_v33 = vld [vmem:[#allocation3] sm:$0xff] }
  0x1a   : > { %v414_v39 = vld [vmem:[#allocation3 + $0x8] sm:$0xff] }
  0x1b   : > { %v428_v40 = vld [vmem:[#allocation4] sm:$0xff] }
  0x94   : > { %v375_v6 = vpop.f32.mrf.mxu0 }
  0x95   : > { %v383_v7 = vsel %vm341_vm0, %v375_v6, -inf }
  0x9a   : > { %v378_v4 = vpop.f32.mrf.mxu2 }
  0x9b   : > { %v386_v5 = vsel %vm341_vm0, %v378_v4, -inf }
  0x9c   : > { %387 = vmax.xlane.f32.xlu0 %v386_v5 }
  0xa4   : > { %384 = vmax.xlane.f32.xlu0 %v383_v7 }
 0x10f   : > { %v388_v11 = vpop.xlane.xlu0 %387 }
 0x110   : > { %v390_v12 = vmax.f32 %v382_v10, %v388_v11 }
 0x112   : > { %476 = vst.msk [vmem:[#allocation2 + $0x8] sm:$0xff] %vm336_vm1, %v390_v12  ;;  %404 = vperm.xlu1 %753, %v390_v12   ;;  %v392_v13 = vsub.f32 %v382_v10, %v390_v12 }
 0x114   : > { %v395_v15 = vmul.f32 1.442695, %v392_v13 }
 0x116   : > { %756 = vpow2.f32 %v395_v15 }
 0x117   : > { %v385_v16 = vpop.xlane.xlu0 %384 }
 0x118   : > { %v389_v17 = vmax.f32 %v381_v14, %v385_v16 }
 0x11a   : > { %v391_v18 = vsub.f32 %v381_v14, %v389_v17  ;;  %475 = vst.msk [vmem:[#allocation2] sm:$0xff] %vm336_vm1, %v389_v17  ;;  %399 = vperm.xlu1 %753, %v389_v17  }
 0x11c   : > { %v393_v19 = vmul.f32 1.442695, %v391_v18  ;;  %v757_v20 = vpop.eup %756 }
 0x11d   : > { %v416_v44 = vmul.f32 %v757_v20, %v414_v39 }
 0x11e   : > { %758 = vpow2.f32 %v393_v19 }
 0x122   : > { %437 = vperm.xlu1 %753, %v757_v20  }
 0x124   : > { %v759_v21 = vpop.eup %758 }
 0x125   : > { %432 = vperm.xlu0 %754, %v759_v21   ;;  %v415_v34 = vmul.f32 %v759_v21, %v413_v33 }
 0x184   : > { %v405_v23 = vpop.permute.xlu1 %404 }
 0x185   : > { %v408_v24 = vsub.f32 %v378_v4, %v405_v23 }
 0x187   : > { %v411_v25 = vmul.f32 1.442695, %v408_v24 }
 0x189   : > { %760 = vpow2.f32 %v411_v25 }
 0x18c   : > { %v400_v26 = vpop.permute.xlu1 %399 }
 0x18d   : > { %v407_v27 = vsub.f32 %v375_v6, %v400_v26 }
 0x18f   : > { %v761_v28 = vpop.eup %760  ;;  %v409_v29 = vmul.f32 1.442695, %v407_v27 }
 0x190   : > { %705 = vmatmul.msk.f32.vlgmr.msra.gmra.mxu3 %vm341_vm0, %v761_v28  ;;  %v420_v32 = vsel %vm341_vm0, %v761_v28, 0.0 }
 0x191   : > { %762 = vpow2.f32 %v409_v29 }
 0x194   : > { %v438_v38 = vpop.permute.xlu1 %437 }
 0x195   : > { %v441_v42 = vmul.f32 %v438_v38, %v429_v37 }
 0x197   : > { %v763_v30 = vpop.eup %762  ;;  %v433_v41 = vpop.permute.xlu0 %432 }
 0x198   : > { %704 = vmatmul.msk.f32.vlgmr.msra.gmra.mxu1 %vm341_vm0, %v763_v30  ;;  %v417_v31 = vsel %vm341_vm0, %v763_v30, 0.0  ;;  %v440_v45 = vmul.f32 %v433_v41, %v428_v40 }
 0x199   : > { %418 = vadd.xlane.f32.xlu2 %v417_v31 }
 0x1a1   : > { %421 = vadd.xlane.f32.xlu2 %v420_v32 }
 0x20c   : > { %v419_v35 = vpop.xlane.xlu2 %418 }
 0x20d   : > { %v423_v36 = vadd.f32 %v419_v35, %v415_v34 }
 0x20f   : > { %426 = vst.msk [vmem:[#allocation3] sm:$0xff] %vm336_vm1, %v423_v36 }
 0x213   : > { %v468_v43 = vpop.f32.mrf.mxu3 }
 0x214   : > { %v472_v46 = vadd.f32 %v468_v43, %v441_v42  ;;  %v422_v47 = vpop.xlane.xlu2 %421 }
 0x215   : > { %v424_v48 = vadd.f32 %v422_v47, %v416_v44  ;;  %v465_v49 = vpop.f32.mrf.mxu1 }
 0x216   : > { %474 = vst.msk [vmem:[#allocation4 + $0x8] sm:$0xff] %vm341_vm0, %v472_v46  ;;  %v471_v50 = vadd.f32 %v465_v49, %v440_v45  ;;  %v482_v51 = vld [vmem:[#allocation3] sm:$0xff] }
 0x217   : > { %427 = vst.msk [vmem:[#allocation3 + $0x8] sm:$0xff] %vm336_vm1, %v424_v48  ;;  %764 = vrcp.f32 %v482_v51  ;;  %v495_v56 = vand.u32 2147483648, %v482_v51  ;;  %v493_v58 = vand.u32 2147483647, %v482_v51  ;;  %vm489_vm3 = vweird.f32 %v482_v51 }
 0x218   : > { %473 = vst.msk [vmem:[#allocation4] sm:$0xff] %vm341_vm0, %v471_v50 }
 0x219   : > { %v496_v61 = vor.u32 1.1754944e-38, %v495_v56  ;;  %vm494_vm5 = vcmp.eq.f32.partialorder %v493_v58, 8.507059e+37 }
 0x21d   : > { %v765_v52 = vpop.eup %764  ;;  %v481_v12 = vld [vmem:[#allocation4 + $0x8] sm:$0xff] }
 0x21e   : > { %v485_v53 = vmul.f32 %v765_v52, %v482_v51  ;;  %v483_v54 = vld [vmem:[#allocation3 + $0x8] sm:$0xff]  ;;  %vm490_vm2 = vweird.f32 %v765_v52 }
 0x21f   : > { %766 = vrcp.f32 %v483_v54  ;;  %vm491_vm4 = vmor %vm489_vm3, %vm490_vm2  ;;  %v509_v2 = vand.u32 2147483648, %v483_v54  ;;  %v507_v4 = vand.u32 2147483647, %v483_v54  ;;  %vm503_vm7 = vweird.f32 %v483_v54  ;;  %v480_v9 = vld [vmem:[#allocation4] sm:$0xff] }
 0x220   : > { %v486_v55 = vsub.f32 1.0, %v485_v53 }
 0x221   : > { %v510_v6 = vor.u32 1.1754944e-38, %v509_v2  ;;  %vm508_vm9 = vcmp.eq.f32.partialorder %v507_v4, 8.507059e+37 }
 0x222   : > { %v487_v57 = vmul.f32 %v765_v52, %v486_v55 }
 0x224   : > { %v488_v59 = vadd.f32 %v765_v52, %v487_v57 }
 0x225   : > { %v767_v60 = vpop.eup %766 }
 0x226   : > { %v492_v62 = vsel %vm491_vm4, %v765_v52, %v488_v59  ;;  %v499_v63 = vmul.f32 %v767_v60, %v483_v54  ;;  %vm504_vm6 = vweird.f32 %v767_v60 }
 0x227   : > { %v497_v0 = vsel %vm494_vm5, %v496_v61, %v492_v62  ;;  %vm505_vm8 = vmor %vm503_vm7, %vm504_vm6 }
 0x228   : > { %514 = vperm.xlu2 %755, %v497_v0   ;;  %v500_v1 = vsub.f32 1.0, %v499_v63 }
 0x22a   : > { %v501_v3 = vmul.f32 %v767_v60, %v500_v1 }
 0x22c   : > { %v502_v5 = vadd.f32 %v767_v60, %v501_v3 }
 0x22e   : > { %v506_v7 = vsel %vm505_vm8, %v767_v60, %v502_v5 }
 0x22f   : > { %v511_v8 = vsel %vm508_vm9, %v510_v6, %v506_v7 }
 0x230   : > { %519 = vperm.xlu1 %753, %v511_v8  }
 0x282   : > { %v515_v10 = vpop.permute.xlu2 %514 }
 0x283   : > { %v522_v11 = vmul.f32 %v515_v10, %v480_v9 }
 0x285   : > { %524 = vst.msk [vmem:[%s330_s10] sm:$0xff] %vm341_vm0, %v522_v11 }
 0x2a2   : > { %v520_v13 = vpop.permute.xlu1 %519 }
 0x2a3   : > { %v523_v14 = vmul.f32 %v520_v13, %v481_v12 }
 0x2a5   : > { %525 = vst.msk [vmem:[%s330_s10 + $0x8] sm:$0xff] %vm341_vm0, %v523_v14 }
 0x2a6 PF: > { %s13_s16 = sadd.s32 1, %s806_s16   ;;  %s930_s12 = smov %s798_s14 }
 0x2a7   : > { %p10_p7 = scmp.ge.s32.totalorder %s13_s16, 6   ;;  %s931_s13 = smov %s802_s15 }
 0x2a8   : > { %s932_s14 = smov %s935_s17  ;;  %s933_s15 = smov %s939_s18 }
 0x2a9   :  { %12 = sbr.rel (!%p10_p7) target bundleno = 3 (0x3), region = 76 }

</bundles_post_ra>
